<compile_context>
chip_gen: v7x
topology: tpu7x:2x2x1
jax: 0.10.0
libtpu: 0.0.40
codegen_flags: <defaults>
</compile_context>

<pallas_src>
import jax
import jax.numpy as jnp
from jax import lax
from jax.experimental import pallas as pl
from jax.experimental.pallas import tpu as pltpu


def _round_up(n, m):
    return ((n + m - 1) // m) * m


def _cdiv(a, b):
    return -(-a // b)


def _batch_tiles(batch, tile_b):
    """Lane-dense (multiple-of-128) batch tiles with minimal padding."""
    n_tiles = max(1, _cdiv(batch, tile_b))
    if n_tiles == 1 and batch >= 256:
        n_tiles = 2  # v7x megacore: give each TensorCore a batch tile
    tb = _round_up(_cdiv(batch, n_tiles), 128)
    return tb, n_tiles, tb * n_tiles


def _prep_params(w1, b1, w2, b2, input_dim, *, use_bf16=False):
    """Split layer_1's t-column; biases become columns for the (feat, batch) layout.

    In the batch-on-lanes layout no weight transposes are needed:
      layer_1: h(H,B) = W1x(H,D) @ z(D,B) + w1t(H,1) * t + b1(H,1)
      layer_2: y(O,B) = W2 (O,H) @ h(H,B) + b2(O,1)
    """
    w1x = w1[:, :input_dim]            # (hidden, D)
    w1t = w1[:, input_dim:]            # (hidden, 1) — t column of layer_1
    b1c = b1.reshape(-1, 1)            # (hidden, 1)
    w2m = w2                           # (out_dim, hidden)
    b2c = b2.reshape(-1, 1)            # (out_dim, 1)
    if use_bf16:                       # v6e / v7x MXU operands; accum stays f32
        w1x = w1x.astype(jnp.bfloat16)
        w2m = w2m.astype(jnp.bfloat16)
    return w1x, w1t, b1c, w2m, b2c


# ---------------------------------------------------------------------------
# Single forward pass kernel (batch-on-lanes, batch-tiled).
# ---------------------------------------------------------------------------
def _forward_kernel(x_ref, t_ref, w1x_ref, w1t_ref, b1_ref, w2_ref, b2_ref, out_ref):
    # x_ref: (D, tb)   t_ref: (1, tb)
    # w1x_ref: (H, D)  w1t_ref: (H, 1)  b1_ref: (H, 1)
    # w2_ref: (O, H)   b2_ref: (O, 1)   out_ref: (O, tb)
    x = x_ref[...]
    t = t_ref[...]
    cdt = w1x_ref.dtype
    h = jnp.dot(w1x_ref[...], x.astype(cdt), preferred_element_type=jnp.float32)
    h = jnp.tanh(h + w1t_ref[...] * t + b1_ref[...])
    y = jnp.dot(w2_ref[...], h.astype(cdt), preferred_element_type=jnp.float32)
    out_ref[...] = (y + b2_ref[...]).astype(out_ref.dtype)


def neural_ode_forward(x, t, w1, b1, w2, b2, *, tile_b=1024, use_bf16=False):
    """Pallas implementation of NeuralODE.forward(x, t)."""
    B, D = x.shape
    out_dim = w2.shape[0]
    w1x, w1t, b1c, w2m, b2c = _prep_params(w1, b1, w2, b2, D, use_bf16=use_bf16)

    tb, n_tiles, b_pad = _batch_tiles(B, tile_b)
    xT = x.T                            # (D, B): batch on lanes
    tT = t.T                            # (1, B)
    if b_pad != B:
        xT = jnp.pad(xT, ((0, 0), (0, b_pad - B)))
        tT = jnp.pad(tT, ((0, 0), (0, b_pad - B)))

    yT = pl.pallas_call(
        _forward_kernel,
        out_shape=jax.ShapeDtypeStruct((out_dim, b_pad), x.dtype),
        grid=(n_tiles,),
        in_specs=[
            pl.BlockSpec((D, tb), lambda i: (0, i)),
            pl.BlockSpec((1, tb), lambda i: (0, i)),
            pl.BlockSpec(w1x.shape, lambda i: (0, 0)),
            pl.BlockSpec(w1t.shape, lambda i: (0, 0)),
            pl.BlockSpec(b1c.shape, lambda i: (0, 0)),
            pl.BlockSpec(w2m.shape, lambda i: (0, 0)),
            pl.BlockSpec(b2c.shape, lambda i: (0, 0)),
        ],
        out_specs=pl.BlockSpec((out_dim, tb), lambda i: (0, i)),
        compiler_params=pltpu.CompilerParams(dimension_semantics=("parallel",)),
    )(xT, tT, w1x, w1t, b1c, w2m, b2c)
    return yT[:, :B].T


# ---------------------------------------------------------------------------
# Fused Euler integrator (NeuralODE.sample with strength=1.0):
# grid = (batch_tiles,) only; the step loop is an in-kernel lax.fori_loop with
# the state carried in vregs and weights loaded once.
# Use sign=-1.0 for inv_sample; strength<1.0 maps to a smaller num_steps.
# ---------------------------------------------------------------------------
def neural_ode_sample(x0, w1, b1, w2, b2, *, num_steps, tile_b=1024,
                      use_bf16=False, sign=1.0):
    B, D = x0.shape
    out_dim = w2.shape[0]
    assert out_dim == D
    w1x, w1t, b1c, w2m, b2c = _prep_params(w1, b1, w2, b2, D, use_bf16=use_bf16)

    tb, n_tiles, b_pad = _batch_tiles(B, tile_b)
    xT = x0.T                           # (D, B)
    if b_pad != B:
        xT = jnp.pad(xT, ((0, 0), (0, b_pad - B)))

    dt = sign * (1.0 / num_steps)
    inv_n = 1.0 / num_steps
    unroll = 4 if num_steps >= 4 else 1

    def kernel(x0_ref, w1x_ref, w1t_ref, b1_ref, w2_ref, b2_ref, out_ref):
        # Hoist weight loads out of the step loop (JAX does not CSE them).
        w1x_v = w1x_ref[...]
        w1t_v = w1t_ref[...]
        b1_v = b1_ref[...]
        w2_v = w2_ref[...]
        b2_v = b2_ref[...]
        cdt = w1x_v.dtype
        z0 = x0_ref[...].astype(jnp.float32)        # (D, tb), carried in vregs

        # TODO(synk): at D=4 the layer-1 dot could be 4 VPU broadcast FMAs
        # instead of an MXU matmul; keep the MXU path until measured.
        def step(i, z):
            t_f = i.astype(jnp.float32) * inv_n      # scalar t = i / N
            h = jnp.dot(w1x_v, z.astype(cdt), preferred_element_type=jnp.float32)
            h = jnp.tanh(h + (w1t_v * t_f + b1_v))   # (H,1) column, lane-broadcast
            pred = jnp.dot(w2_v, h.astype(cdt), preferred_element_type=jnp.float32)
            return z + (pred + b2_v) * dt            # Euler step

        z = lax.fori_loop(0, num_steps, step, z0, unroll=unroll)
        out_ref[...] = z.astype(out_ref.dtype)

    zT = pl.pallas_call(
        kernel,
        out_shape=jax.ShapeDtypeStruct((D, b_pad), x0.dtype),
        grid=(n_tiles,),
        in_specs=[
            pl.BlockSpec((D, tb), lambda i: (0, i)),
            pl.BlockSpec(w1x.shape, lambda i: (0, 0)),
            pl.BlockSpec(w1t.shape, lambda i: (0, 0)),
            pl.BlockSpec(b1c.shape, lambda i: (0, 0)),
            pl.BlockSpec(w2m.shape, lambda i: (0, 0)),
            pl.BlockSpec(b2c.shape, lambda i: (0, 0)),
        ],
        out_specs=pl.BlockSpec((D, tb), lambda i: (0, i)),
        compiler_params=pltpu.CompilerParams(dimension_semantics=("parallel",)),
    )(xT, w1x, w1t, b1c, w2m, b2c)
    return zT[:, :B].T


# ---------------------------------------------------------------------------
# Pure-JAX references.
# ---------------------------------------------------------------------------
def _reference_forward(x, t, w1, b1, w2, b2):
    xt = jnp.concatenate([x, t], axis=1)
    h = jnp.tanh(xt @ w1.T + b1)
    return h @ w2.T + b2


def _reference_sample(x0, w1, b1, w2, b2, num_steps):
    dt = 1.0 / num_steps
    z = x0
    for i in range(num_steps):
        t = jnp.full((x0.shape[0], 1), i / num_steps, dtype=x0.dtype)
        z = z + _reference_forward(z, t, w1, b1, w2, b2) * dt
    return z


if __name__ == "__main__":
    # Module hyper-params (synthetic, deterministic init).
    input_dim = 4          # -> self.input_dim = 5, self.output_dim = 4
    hidden = 32
    batch = 8
    num_steps = 64         # small N for the fused Euler-solve demo

    in_dim_p1 = input_dim + 1
    out_dim = input_dim

    key = jax.random.PRNGKey(0)
    k_x, k_t, k_w1, k_b1, k_w2, k_b2 = jax.random.split(key, 6)

    x = jax.random.normal(k_x, (batch, input_dim), dtype=jnp.float32)
    t = jax.random.uniform(k_t, (batch, 1), dtype=jnp.float32)

    # nn.Linear layouts: layer_1.weight (hidden, D+1), layer_2.weight (D, hidden)
    w1 = jax.random.normal(k_w1, (hidden, in_dim_p1), dtype=jnp.float32) * 0.1
    b1 = jax.random.normal(k_b1, (hidden,), dtype=jnp.float32) * 0.1
    w2 = jax.random.normal(k_w2, (out_dim, hidden), dtype=jnp.float32) * 0.1
    b2 = jax.random.normal(k_b2, (out_dim,), dtype=jnp.float32) * 0.1

    # --- single forward pass ---
    y = jax.block_until_ready(neural_ode_forward(x, t, w1, b1, w2, b2))
    y_ref = _reference_forward(x, t, w1, b1, w2, b2)
    assert y.shape == (batch, out_dim)
    assert jnp.allclose(y, y_ref, atol=1e-5, rtol=1e-5)

    # --- fused Euler integration (NeuralODE.sample, strength=1.0) ---
    z = jax.block_until_ready(
        neural_ode_sample(x, w1, b1, w2, b2, num_steps=num_steps))
    z_ref = _reference_sample(x, w1, b1, w2, b2, num_steps)
    assert z.shape == (batch, out_dim)
    assert jnp.allclose(z, z_ref, atol=1e-4, rtol=1e-4)

    print("KERNEL_OK")
</pallas_src>

<mosaic_0001>
module attributes {stable_mosaic.version = 11 : i64} {
  func.func @_forward_kernel(%arg0: i32, %arg1: memref<4x128xf32, #tpu.memory_space<vmem>>, %arg2: memref<1x128xf32, #tpu.memory_space<vmem>>, %arg3: memref<32x4xf32, #tpu.memory_space<vmem>>, %arg4: memref<32x1xf32, #tpu.memory_space<vmem>>, %arg5: memref<32x1xf32, #tpu.memory_space<vmem>>, %arg6: memref<4x32xf32, #tpu.memory_space<vmem>>, %arg7: memref<4x1xf32, #tpu.memory_space<vmem>>, %arg8: memref<4x128xf32, #tpu.memory_space<vmem>>) attributes {dimension_semantics = [#tpu.dimension_semantics<parallel>], iteration_bounds = array<i64: 1>, scalar_prefetch = 0 : i64, scratch_operands = 0 : i64, tpu.core_type = #tpu.core_type<tc>, window_params = [{transform_indices = @transform_0, window_bounds = array<i64: 4, 128>}, {transform_indices = @transform_1, window_bounds = array<i64: 1, 128>}, {pipeline_mode = #tpu.pipeline_mode<synchronous>, transform_indices = @transform_2, window_bounds = array<i64: 32, 4>}, {pipeline_mode = #tpu.pipeline_mode<synchronous>, transform_indices = @transform_3, window_bounds = array<i64: 32, 1>}, {pipeline_mode = #tpu.pipeline_mode<synchronous>, transform_indices = @transform_4, window_bounds = array<i64: 32, 1>}, {pipeline_mode = #tpu.pipeline_mode<synchronous>, transform_indices = @transform_5, window_bounds = array<i64: 4, 32>}, {pipeline_mode = #tpu.pipeline_mode<synchronous>, transform_indices = @transform_6, window_bounds = array<i64: 4, 1>}, {transform_indices = @transform_7, window_bounds = array<i64: 4, 128>}]} {
    %c0 = arith.constant 0 : index
    %c0_0 = arith.constant 0 : index
    %0 = vector.load %arg1[%c0, %c0_0] : memref<4x128xf32, #tpu.memory_space<vmem>>, vector<4x128xf32>
    %c0_1 = arith.constant 0 : index
    %c0_2 = arith.constant 0 : index
    %1 = vector.load %arg2[%c0_1, %c0_2] : memref<1x128xf32, #tpu.memory_space<vmem>>, vector<1x128xf32>
    %c0_3 = arith.constant 0 : index
    %c0_4 = arith.constant 0 : index
    %2 = vector.load %arg3[%c0_3, %c0_4] : memref<32x4xf32, #tpu.memory_space<vmem>>, vector<32x4xf32>
    %cst = arith.constant dense<0.000000e+00> : vector<32x128xf32>
    %3 = tpu.matmul %2, %0, %cst {dimension_numbers = #tpu.dot_dimension_numbers<[1], [0], [0], [1], [0, 0, 1, 1], [], []>} : vector<32x4xf32>, vector<4x128xf32>, vector<32x128xf32> -> vector<32x128xf32>
    %c0_5 = arith.constant 0 : index
    %c0_6 = arith.constant 0 : index
    %4 = vector.load %arg4[%c0_5, %c0_6] : memref<32x1xf32, #tpu.memory_space<vmem>>, vector<32x1xf32>
    %5 = vector.broadcast %4 : vector<32x1xf32> to vector<32x128xf32>
    %6 = vector.broadcast %1 : vector<1x128xf32> to vector<32x128xf32>
    %7 = arith.mulf %5, %6 : vector<32x128xf32>
    %8 = arith.addf %3, %7 : vector<32x128xf32>
    %c0_7 = arith.constant 0 : index
    %c0_8 = arith.constant 0 : index
    %9 = vector.load %arg5[%c0_7, %c0_8] : memref<32x1xf32, #tpu.memory_space<vmem>>, vector<32x1xf32>
    %10 = vector.broadcast %9 : vector<32x1xf32> to vector<32x128xf32>
    %11 = arith.addf %8, %10 : vector<32x128xf32>
    %12 = math.tanh %11 : vector<32x128xf32>
    %c0_9 = arith.constant 0 : index
    %c0_10 = arith.constant 0 : index
    %13 = vector.load %arg6[%c0_9, %c0_10] : memref<4x32xf32, #tpu.memory_space<vmem>>, vector<4x32xf32>
    %cst_11 = arith.constant dense<0.000000e+00> : vector<4x128xf32>
    %14 = tpu.matmul %13, %12, %cst_11 {dimension_numbers = #tpu.dot_dimension_numbers<[1], [0], [0], [1], [0, 0, 1, 1], [], []>} : vector<4x32xf32>, vector<32x128xf32>, vector<4x128xf32> -> vector<4x128xf32>
    %c0_12 = arith.constant 0 : index
    %c0_13 = arith.constant 0 : index
    %15 = vector.load %arg7[%c0_12, %c0_13] : memref<4x1xf32, #tpu.memory_space<vmem>>, vector<4x1xf32>
    %16 = vector.broadcast %15 : vector<4x1xf32> to vector<4x128xf32>
    %17 = arith.addf %14, %16 : vector<4x128xf32>
    %c0_14 = arith.constant 0 : index
    %c0_15 = arith.constant 0 : index
    %18 = vector.load %arg8[%c0_14, %c0_15] : memref<4x128xf32, #tpu.memory_space<vmem>>, vector<4x128xf32>
    tpu.vector_store %arg8[%c0_14, %c0_15], %17 {strides = array<i32>} : memref<4x128xf32, #tpu.memory_space<vmem>>, vector<4x128xf32>,
    return
  }
  func.func @transform_0(%arg0: i32) -> (i32, i32) {
    %c0_i32 = arith.constant 0 : i32
    %c0_i32_0 = arith.constant 0 : i32
    return %c0_i32, %arg0 : i32, i32
  }
  func.func @transform_1(%arg0: i32) -> (i32, i32) {
    %c0_i32 = arith.constant 0 : i32
    %c0_i32_0 = arith.constant 0 : i32
    return %c0_i32, %arg0 : i32, i32
  }
  func.func @transform_2(%arg0: i32) -> (i32, i32) {
    %c0_i32 = arith.constant 0 : i32
    %c0_i32_0 = arith.constant 0 : i32
    %c0_i32_1 = arith.constant 0 : i32
    return %c0_i32, %c0_i32_0 : i32, i32
  }
  func.func @transform_3(%arg0: i32) -> (i32, i32) {
    %c0_i32 = arith.constant 0 : i32
    %c0_i32_0 = arith.constant 0 : i32
    %c0_i32_1 = arith.constant 0 : i32
    return %c0_i32, %c0_i32_0 : i32, i32
  }
  func.func @transform_4(%arg0: i32) -> (i32, i32) {
    %c0_i32 = arith.constant 0 : i32
    %c0_i32_0 = arith.constant 0 : i32
    %c0_i32_1 = arith.constant 0 : i32
    return %c0_i32, %c0_i32_0 : i32, i32
  }
  func.func @transform_5(%arg0: i32) -> (i32, i32) {
    %c0_i32 = arith.constant 0 : i32
    %c0_i32_0 = arith.constant 0 : i32
    %c0_i32_1 = arith.constant 0 : i32
    return %c0_i32, %c0_i32_0 : i32, i32
  }
  func.func @transform_6(%arg0: i32) -> (i32, i32) {
    %c0_i32 = arith.constant 0 : i32
    %c0_i32_0 = arith.constant 0 : i32
    %c0_i32_1 = arith.constant 0 : i32
    return %c0_i32, %c0_i32_0 : i32, i32
  }
  func.func @transform_7(%arg0: i32) -> (i32, i32) {
    %c0_i32 = arith.constant 0 : i32
    %c0_i32_0 = arith.constant 0 : i32
    return %c0_i32, %arg0 : i32, i32
  }
}

</mosaic_0001>

<bundles_post_ra>
// kernel: tpu_custom_call.1
= control target key start
LH: loop header
LB: loop body
LE: loop exit
PB: predicated region body
PF: predicated region fallthrough
CT: control target
= control target key end

     0   :  { %vm80_vm0 = vcmask 1043456   ;;  %vm67_vm1 = vcmask 31744   ;;  %v378_v5 = vmov 0   ;;  %s487_s0 = inlined_call_operand.vmem [shape: f32[4,128], index: 0, kind: input, shape index: {}]   ;;  %s488_s1 = inlined_call_operand.vmem [shape: f32[1,128], index: 1, kind: input, shape index: {}]   ;;  %s489_s2 = inlined_call_operand.vmem [shape: f32[32,4], index: 2, kind: input, shape index: {}]   ;;  %s490_s3 = inlined_call_operand.vmem [shape: f32[32,1], index: 3, kind: input, shape index: {}]   ;;  %s491_s4 = inlined_call_operand.vmem [shape: f32[32,1], index: 4, kind: input, shape index: {}]   ;;  %s492_s5 = inlined_call_operand.vmem [shape: f32[4,32], index: 5, kind: input, shape index: {}]   ;;  %s493_s6 = inlined_call_operand.vmem [shape: f32[4,1], index: 6, kind: input, shape index: {}]   ;;  %s494_s7 = inlined_call_operand.hbm [shape: f32[4,128], index: 7, kind: output, shape index: {}]  }
   0x1   :  { %v27_v0 = vld [vmem:[%s487_s0] sm:$0xf]  ;;  %v30_v2 = vld [vmem:[%s489_s2 + $0x8] sm:$0xff]  ;;  %v31_v3 = vld [vmem:[%s489_s2 + $0x10] sm:$0xff]  ;;  %344 = vset.pattern.permute.xlu0 %v378_v5  ;;  %345 = vset.pattern.permute.xlu1 %v378_v5 }
   0x2   :  { %v29_v1 = vld [vmem:[%s489_s2] sm:$0xff]  ;;  %314 = vmatprep.subr.msk.mxu0 %vm80_vm0, %v27_v0  ;;  %v35_v6 = vld [vmem:[%s490_s3 + $0x10] sm:$0xff]  ;;  %v32_v7 = vld [vmem:[%s489_s2 + $0x18] sm:$0xff] }
   0x3   :  { %316 = vmatprep.mubr.msk.f32.mxu0 %vm67_vm1, %v29_v1  ;;  %v33_v4 = vld [vmem:[%s490_s3] sm:$0xff]  ;;  %315 = vmatpush3.msk.msra.mxu0 %vm80_vm0, %v27_v0  ;;  %v34_v8 = vld [vmem:[%s490_s3 + $0x8] sm:$0xff] }
   0x4   :  { %317 = vmatmul.mubr.msk.f32.vlgmr.msra.gmra.mrb[0].mxu0 %vm67_vm1, %v30_v2  ;;  %39 = vperm.xlu0 %344, %v33_v4  }
   0x5   :  { %319 = vmatprep.mubr.msk.f32.mxu0 %vm67_vm1, %v31_v3  ;;  %49 = vperm.xlu1 %345, %v35_v6  }
   0x6   :  { %12 = vsyncpa [#allocation3], 0  ;;  %v36_v9 = vld [vmem:[%s490_s3 + $0x18] sm:$0xff]  ;;  %v169_v10 = vld [vmem:[%s491_s4] sm:$0xff]  ;;  %v379_v15 = vmov 0.0|0.0   ;;  %vm380_vm2 = vmmov 0  }
   0x7   :  { %v170_v11 = vld [vmem:[%s491_s4 + $0x8] sm:$0xff]  ;;  %v171_v12 = vld [vmem:[%s491_s4 + $0x10] sm:$0xff]  ;;  %v172_v13 = vld [vmem:[%s491_s4 + $0x18] sm:$0xff]  ;;  %333 = vmatprep.subr.bf16.mxu1 %v379_v15  ;;  %v381_v16 = vmov 0.0   ;;  %vm208_vm3 = vcmask 261120  }
   0x8   :  { %320 = vmatmul.mubr.msk.f32.gmra.mrb[2].mxu0 %vm67_vm1, %v32_v7  ;;  %44 = vperm.xlu0 %344, %v34_v8   ;;  %v202_v14 = vld [vmem:[%s493_s6] sm:$0xf]  ;;  %s382_s6 = smov [#allocation2]  }
   0x9   :  { %54 = vperm.xlu1 %345, %v36_v9   ;;  %330 = vmatprep.mubr.msk.f32.mxu1 %vm380_vm2, %v381_v16  ;;  %v297_v21 = vld [vmem:[%s488_s1] ss:$0 sm:$0xff]  ;;  %s289_s28 = sshll.u32 %s382_s6, 4  ;;  %s290_s28 = int_to_ptr.vmem [resolvable:$true] %s289_s28 }
   0xa   :  { %v201_v48 = vld [vmem:[%s492_s5] sm:$0xf]  ;;  %s354_s29 = scalar_lea.vmem %s290_s28, 64  ;;  %p359_p1 = scmp.lt.s32.totalorder %s290_s28, %s290_s28 }
   0xb   :  { %p355_p0 = scmp.ne.s32.totalorder %s290_s28, %s354_s29  ;;  %p360_p2 = scmp.lt.s32.totalorder %s354_s29, %s354_s29 }
   0xc   :  { %175 = vperm.xlu0 %344, %v169_v10  }
   0xd   :  { %180 = vperm.xlu1 %345, %v170_v11   ;;  %p361_p3 = por %p360_p2, %p359_p1 }
   0xf   :  { %p362_p4 = pnand %p361_p3, %p355_p0 }
  0x10   :  { %185 = vperm.xlu0 %344, %v171_v12  }
  0x11   :  { %190 = vperm.xlu1 %345, %v172_v13  }
  0x14   :  { %205 = vperm.xlu0 %344, %v202_v14  }
  0x83   :  { %v40_v18 = vpop.permute.xlu0 %39 }
  0x84   :  { %v50_v17 = vpop.permute.xlu1 %49  ;;  %v63_v23 = vmul.f32 %v297_v21, %v40_v18 }
  0x85   :  { %v65_v32 = vmul.f32 %v297_v21, %v50_v17 }
  0x87   :  { %v45_v20 = vpop.permute.xlu0 %44 }
  0x88   :  { %v55_v19 = vpop.permute.xlu1 %54  ;;  %v64_v22 = vmul.f32 %v297_v21, %v45_v20 }
  0x89   :  { %v66_v30 = vmul.f32 %v297_v21, %v55_v19 }
  0x8b   :  { %v176_v26 = vpop.permute.xlu0 %175 }
  0x8c   :  { %v181_v24 = vpop.permute.xlu1 %180 }
  0x8f   :  { %v186_v39 = vpop.permute.xlu0 %185 }
  0x90   :  { %v191_v37 = vpop.permute.xlu1 %190 }
  0x93   :  { %v206_v49 = vpop.permute.xlu0 %205 }
  0xd7   :  { %v318_v25 = vpop.f32.mrb[0].mxu0 }
  0xd8   :  { %v156_v27 = vadd.f32 %v318_v25, %v64_v22  ;;  %v150_v28 = vpop.f32.mrb[1].mxu0 }
  0xd9   :  { %v151_v29 = vadd.f32 %v150_v28, %v63_v23 }
  0xda   :  { %v194_v31 = vadd.f32 %v181_v24, %v156_v27 }
  0xdb   :  { %v193_v33 = vadd.f32 %v176_v26, %v151_v29  ;;  %v321_v34 = vpop.f32.mrb[2].mxu0 }
  0xdc   :  { %346 = vtanh.f32 %v194_v31  ;;  %v166_v35 = vadd.f32 %v321_v34, %v66_v30  ;;  %v160_v36 = vpop.f32.mrb[3].mxu0 }
  0xdd   :  { %348 = vtanh.f32 %v193_v33  ;;  %v161_v38 = vadd.f32 %v160_v36, %v65_v32 }
  0xde   :  { %v196_v40 = vadd.f32 %v191_v37, %v166_v35 }
  0xdf   :  { %v195_v41 = vadd.f32 %v186_v39, %v161_v38 }
  0xe0   :  { %350 = vtanh.f32 %v196_v40 }
  0xe1   :  { %352 = vtanh.f32 %v195_v41 }
  0xe6   :  { %v347_v42 = vpop.eup %346 }
  0xe7   :  { %v349_v43 = vpop.eup %348 }
  0xe8   :  { %v334_v44 = vpack.c.bf16 %v347_v42, %v349_v43 }
  0xea   :  { %v351_v45 = vpop.eup %350  ;;  %335 = vmatpush3.bf16.msra.mxu1 %v334_v44 }
  0xeb   :  { %v353_v46 = vpop.eup %352  ;;  %336 = vmatprep.subr.bf16.mxu1 %v379_v15 }
  0xec   :  { %v337_v47 = vpack.c.bf16 %v351_v45, %v353_v46 }
  0xee   :  { %338 = vmatpush3.bf16.msra.mxu1 %v337_v47 }
  0xf1   :  { %331 = vmatmul.mubr.msk.f32.vlgmr.msra.gmra.mrb[0].mxu1 %vm208_vm3, %v201_v48 }
 0x1c4   :  { %v278_v50 = vpop.f32.mrb[0].mxu1 }
 0x1c5   :  { %v279_v51 = vadd.f32 %v278_v50, %v206_v49  ;;  %v332_v52 = vpop.f32.mrb[1].mxu1 }
 0x1c7   :  { %282 = vst [vmem:[#allocation2] sm:$0xf] %v279_v51 }
 0x1c8   :  { %365 = shalt.err (!%p362_p4)
}
 0x1c9   :  { %s366_s5 = scalar_lea.hbm %s494_s7, 64 }
 0x1ca   :  { %p367_p5 = scmp.ne.s32.totalorder %s494_s7, %s366_s5  ;;  %p370_p6 = scmp.lt.u32.totalorder %s366_s5, %s494_s7 }
 0x1cc   :  { %p372_p7 = pnand %p370_p6, %p367_p5 }
 0x1ce   :  { %375 = shalt.err (!%p372_p7)
}
 0x1cf   :  { %292 = dma.vmem_to_hbm [thread:$0]  %s290_s28, 64, %s494_s7, [#allocation3]  }
 0x1d0   :  { %376 = dma.done.wait [#allocation3], 64  }
 0x1d1   :  { %377 = vsyncadd [#allocation3], 4294967232 }
 0x1d2   :  { %296 = vsyncpa [#allocation3], 1 }

</bundles_post_ra>
